<compile_context>
chip_gen: v7x
topology: tpu7x:2x2x1
jax: 0.10.0
libtpu: 0.0.40
codegen_flags: <defaults>
</compile_context>

<pallas_src>
import functools

import jax
import jax.numpy as jnp
from jax import lax
from jax.experimental import pallas as pl
from jax.experimental.pallas import tpu as pltpu

_LOG2E = 1.4426950408889634


def _soft_histogram_kernel(centers_ref, x_ref, o_ref, e_ref, *,
                           scale, n_valid, tile_n, chunk_bins, num_bin_chunks,
                           stable, vmin, delta, bins):
    core = pl.program_id(0)     # "parallel" slice (2-TC split on v7x)
    j = pl.program_id(1)        # sample-tile step (reduction axis, "arbitrary")

    @pl.when(j == 0)
    def _():
        o_ref[...] = jnp.zeros_like(o_ref)

    x = x_ref[...]                            # (1, V, 8, 128) f32
    V = x.shape[1]
    CB, NB = chunk_bins, num_bin_chunks

    if stable:
        # Exact max logit via the nearest-center distance (analytic, cheap):
        # softmax is shift-invariant, so subtracting it changes nothing except
        # guaranteeing exp2 arguments in (-inf, 0] with max exactly 0.
        u = (x - vmin) / delta - 0.5
        k = jnp.clip(jnp.floor(u + 0.5), 0.0, float(bins - 1))
        dmin = x - (vmin + delta * (k + 0.5))
        m2 = dmin * dmin                       # (1, V, 8, 128)
    else:
        m2 = None

    # ---- Pass 1: exp (EUP), stored exactly once; running denominator. ----
    def pass1(i, denom):
        b0 = pl.multiple_of(i * CB, CB)
        c = centers_ref[pl.ds(b0, CB)]         # (CB, 1, 8, 128), VMEM resident
        diff = c - x                           # (CB, V, 8, 128), free broadcasts
        d2 = diff * diff
        if m2 is not None:
            d2 = d2 - m2
        e = jnp.exp2(d2 * scale)               # scale = -log2(e)/sigma^2  (<= 0)
        e_ref[pl.ds(b0, CB)] = e               # staged once to VMEM scratch
        return denom + jnp.sum(e, axis=0)      # cross-vreg VALU adds -> (V,8,128)

    denom = lax.fori_loop(0, NB, pass1, jnp.zeros((V, 8, 128), jnp.float32))

    # EUP approximate reciprocal + one Newton step (f32-accurate).  Tiny clamp
    # keeps r finite even if every exp underflowed (out-of-domain inputs).
    denom = jnp.maximum(denom, 1e-30)
    r = pl.reciprocal(denom, approx=True)
    r = r * (2.0 - denom * r)                  # (V, 8, 128)

    if n_valid is not None:
        # Mask the per-sample reciprocal (V vregs), not the full weight tensor.
        base = (core * pl.num_programs(1) + j) * tile_n
        i0 = lax.broadcasted_iota(jnp.int32, (V, 8, 128), 0)
        i1 = lax.broadcasted_iota(jnp.int32, (V, 8, 128), 1)
        i2 = lax.broadcasted_iota(jnp.int32, (V, 8, 128), 2)
        gidx = base + (i0 * 8 + i1) * 128 + i2
        r = jnp.where(gidx < n_valid, r, 0.0)  # select: kills inf/NaN in padding

    # ---- Pass 2: reload e once, normalize, fold sample vreg-columns, acc. ----
    def pass2(i, carry):
        b0 = pl.multiple_of(i * CB, CB)
        e = e_ref[pl.ds(b0, CB)]               # (CB, V, 8, 128)
        part = jnp.sum(e * r, axis=1)          # fold over V -> (CB, 8, 128)
        cur = o_ref[0, pl.ds(b0, CB)]
        o_ref[0, pl.ds(b0, CB)] = cur + part   # small lane-dense accumulator RMW
        return carry

    lax.fori_loop(0, NB, pass2, 0)


def soft_histogram(x, *, bins, vmin, vmax, sigma, tn=8192, num_cores=1,
                   stable=False):
    """x: (N,) float -> (bins,) float32, matching SoftHistogram.forward.

    tn: samples per grid step (multiple of 1024; sweep 4096..16384).
    num_cores: leading "parallel" grid axis (set 2 on v7x; no-op elsewhere).
    stable: subtract the exact analytic max logit before exp (use when x may be
            far outside [vmin, vmax] or sigma << bin width).
    """
    x = x.astype(jnp.float32)
    n = x.shape[0]
    assert tn % 1024 == 0, "tn must be a multiple of 1024"
    V = tn // 1024                 # sample vreg-columns per grid step
    C = int(num_cores)

    # Pad N up to a multiple of num_cores * tn; padded lanes are masked in-kernel.
    chunk = C * tn
    n_pad = ((n + chunk - 1) // chunk) * chunk
    if n_pad != n:
        pad_val = 0.5 * (float(vmin) + float(vmax))   # benign exp argument
        x = jnp.concatenate([x, jnp.full((n_pad - n,), pad_val, jnp.float32)])
    S = n_pad // chunk                                 # steps per core slice
    x4d = x.reshape(C, S * V, 8, 128)

    delta = float(vmax - vmin) / float(bins)
    centers = float(vmin) + delta * (jnp.arange(bins, dtype=jnp.float32) + 0.5)
    # One vreg per bin (sublane/lane replicated); broadcast over V is free.
    centers_b = jnp.broadcast_to(centers[:, None, None, None], (bins, 1, 8, 128))

    # Bin-chunk size for the two in-kernel passes: keep CB*V vregs of live exp
    # values modest so the register allocator never spills inside a chunk.
    cb = 1
    for cand in (32, 16, 8, 4, 2, 1):
        if bins % cand == 0 and cand * V <= 32:
            cb = cand
            break
    nb = bins // cb

    kernel = functools.partial(
        _soft_histogram_kernel,
        scale=-_LOG2E / (float(sigma) ** 2),   # log2(e) folded into the scale
        n_valid=(n if n_pad != n else None),
        tile_n=tn,
        chunk_bins=cb,
        num_bin_chunks=nb,
        stable=stable,
        vmin=float(vmin),
        delta=delta,
        bins=bins,
    )

    out4 = pl.pallas_call(
        kernel,
        out_shape=jax.ShapeDtypeStruct((C, bins, 8, 128), jnp.float32),
        grid_spec=pltpu.PrefetchScalarGridSpec(
            num_scalar_prefetch=0,
            grid=(C, S),
            in_specs=[
                # centers: constant block index -> stays resident in VMEM
                pl.BlockSpec((bins, 1, 8, 128), lambda c, j: (0, 0, 0, 0)),
                # x: dense (V, 8, 128) sample slab per step, per core slice
                pl.BlockSpec((1, V, 8, 128), lambda c, j: (c, j, 0, 0)),
            ],
            # per-core folded accumulator; constant across j -> accumulator block
            out_specs=pl.BlockSpec((1, bins, 8, 128), lambda c, j: (c, 0, 0, 0)),
            scratch_shapes=[
                # staging buffer for e = exp(logits): stored once, loaded once
                pltpu.VMEM((bins, V, 8, 128), jnp.float32),
            ],
        ),
        compiler_params=pltpu.CompilerParams(
            dimension_semantics=("parallel", "arbitrary")),
    )(centers_b, x4d)

    # Tiny final reduction (core slices + the folded (8,128) sample residue).
    return out4.sum(axis=(0, 2, 3))


def _reference(x, *, bins, vmin, vmax, sigma):
    delta = float(vmax - vmin) / float(bins)
    centers = float(vmin) + delta * (jnp.arange(bins, dtype=jnp.float32) + 0.5)
    d = jnp.abs(centers[:, None] - x[None, :])            # cdist of 1-D points
    w = jax.nn.softmax(-(d ** 2) / (float(sigma) ** 2), axis=0)
    return w.sum(axis=1)


if __name__ == "__main__":
    bins, vmin, vmax, sigma = 64, 0.0, 1.0, 0.25
    n = 4000   # ragged on purpose: exercises the padded-lane masking path

    key = jax.random.PRNGKey(0)
    x = jax.random.uniform(key, (n,), dtype=jnp.float32, minval=vmin, maxval=vmax)

    # Small tn for the small test (2 grid steps + mask); default tn=8192 for real N.
    out = soft_histogram(x, bins=bins, vmin=vmin, vmax=vmax, sigma=sigma,
                         tn=2048, num_cores=1)
    out = jax.block_until_ready(out)

    ref = _reference(x, bins=bins, vmin=vmin, vmax=vmax, sigma=sigma)
    assert out.shape == (bins,)
    assert jnp.allclose(out, ref, atol=1e-4, rtol=1e-4), (
        f"max abs err = {jnp.max(jnp.abs(out - ref))}")
    assert jnp.allclose(out.sum(), jnp.float32(n), rtol=1e-4)  # counts conserved

    print("KERNEL_OK")
</pallas_src>

<mosaic_0001>
module attributes {stable_mosaic.version = 11 : i64} {
  func.func @_soft_histogram_kernel(%arg0: i32, %arg1: i32, %arg2: memref<64x1x8x128xf32, #tpu.memory_space<vmem>>, %arg3: memref<1x2x8x128xf32, #tpu.memory_space<vmem>>, %arg4: memref<1x64x8x128xf32, #tpu.memory_space<vmem>>, %arg5: memref<64x2x8x128xf32, #tpu.memory_space<vmem>>) attributes {dimension_semantics = [#tpu.dimension_semantics<parallel>, #tpu.dimension_semantics<arbitrary>], iteration_bounds = array<i64: 1, 2>, scalar_prefetch = 0 : i64, scratch_operands = 1 : i64, tpu.core_type = #tpu.core_type<tc>, window_params = [{pipeline_mode = #tpu.pipeline_mode<synchronous>, transform_indices = @transform_0, window_bounds = array<i64: 64, 1, 8, 128>}, {transform_indices = @transform_1, window_bounds = array<i64: 1, 2, 8, 128>}, {transform_indices = @transform_2, window_bounds = array<i64: 1, 64, 8, 128>}]} {
    %c0_i32 = arith.constant 0 : i32
    %0 = arith.cmpi eq, %arg1, %c0_i32 : i32
    %1 = arith.extui %0 : i1 to i32
    %c0_i32_0 = arith.constant 0 : i32
    %2 = arith.cmpi ne, %1, %c0_i32_0 : i32
    scf.if %2 {
      %cst_13 = arith.constant 0.000000e+00 : f32
      %33 = vector.broadcast %cst_13 : f32 to vector<1x64x8x128xf32>
      %c0_14 = arith.constant 0 : index
      %c0_15 = arith.constant 0 : index
      %c0_16 = arith.constant 0 : index
      %c0_17 = arith.constant 0 : index
      %34 = vector.load %arg4[%c0_14, %c0_15, %c0_16, %c0_17] : memref<1x64x8x128xf32, #tpu.memory_space<vmem>>, vector<1x64x8x128xf32>
      tpu.vector_store %arg4[%c0_14, %c0_15, %c0_16, %c0_17], %33 {strides = array<i32>} : memref<1x64x8x128xf32, #tpu.memory_space<vmem>>, vector<1x64x8x128xf32>,
    } else {
    }
    %c0 = arith.constant 0 : index
    %c0_1 = arith.constant 0 : index
    %c0_2 = arith.constant 0 : index
    %c0_3 = arith.constant 0 : index
    %3 = vector.load %arg3[%c0, %c0_1, %c0_2, %c0_3] : memref<1x2x8x128xf32, #tpu.memory_space<vmem>>, vector<1x2x8x128xf32>
    %cst = arith.constant 0.000000e+00 : f32
    %4 = vector.broadcast %cst : f32 to vector<2x8x128xf32>
    %c0_i32_4 = arith.constant 0 : i32
    %c4_i32 = arith.constant 4 : i32
    %5 = arith.addi %c0_i32_4, %c4_i32 : i32
    %c1_i32 = arith.constant 1 : i32
    %6 = scf.for %arg6 = %c0_i32_4 to %5 step %c1_i32 iter_args(%arg7 = %4) -> (vector<2x8x128xf32>)  : i32 {
      %c16_i32 = arith.constant 16 : i32
      %33 = arith.muli %arg6, %c16_i32 : i32
      %34 = tpu.assume_multiple %33, 16 : i32
      %35 = arith.index_cast %34 : i32 to index
      %c0_13 = arith.constant 0 : index
      %c0_14 = arith.constant 0 : index
      %c0_15 = arith.constant 0 : index
      %36 = vector.load %arg2[%35, %c0_13, %c0_14, %c0_15] : memref<64x1x8x128xf32, #tpu.memory_space<vmem>>, vector<16x1x8x128xf32>
      %37 = vector.broadcast %36 : vector<16x1x8x128xf32> to vector<16x2x8x128xf32>
      %38 = vector.broadcast %3 : vector<1x2x8x128xf32> to vector<16x2x8x128xf32>
      %39 = arith.subf %37, %38 : vector<16x2x8x128xf32>
      %40 = arith.mulf %39, %39 : vector<16x2x8x128xf32>
      %cst_16 = arith.constant -23.0831203 : f32
      %41 = vector.broadcast %cst_16 : f32 to vector<16x2x8x128xf32>
      %42 = arith.mulf %40, %41 : vector<16x2x8x128xf32>
      %43 = math.exp2 %42 : vector<16x2x8x128xf32>
      %44 = arith.index_cast %34 : i32 to index
      %c0_17 = arith.constant 0 : index
      %c0_18 = arith.constant 0 : index
      %c0_19 = arith.constant 0 : index
      %45 = vector.load %arg5[%44, %c0_17, %c0_18, %c0_19] : memref<64x2x8x128xf32, #tpu.memory_space<vmem>>, vector<16x2x8x128xf32>
      tpu.vector_store %arg5[%44, %c0_17, %c0_18, %c0_19], %43 {strides = array<i32>} : memref<64x2x8x128xf32, #tpu.memory_space<vmem>>, vector<16x2x8x128xf32>,
      %cst_20 = arith.constant dense<0.000000e+00> : vector<2x8x128xf32>
      %46 = vector.multi_reduction <add>, %43, %cst_20 [0] : vector<16x2x8x128xf32> to vector<2x8x128xf32>
      %47 = arith.addf %arg7, %46 : vector<2x8x128xf32>
      scf.yield %47 : vector<2x8x128xf32>
    }
    %c4_i32_5 = arith.constant 4 : i32
    %cst_6 = arith.constant 1.000000e-30 : f32
    %7 = vector.broadcast %cst_6 : f32 to vector<2x8x128xf32>
    %8 = arith.maximumf %6, %7 : vector<2x8x128xf32>
    %9 = tpu.reciprocal %8 {approx = true} : vector<2x8x128xf32> -> vector<2x8x128xf32>
    %10 = arith.mulf %8, %9 : vector<2x8x128xf32>
    %cst_7 = arith.constant 2.000000e+00 : f32
    %11 = vector.broadcast %cst_7 : f32 to vector<2x8x128xf32>
    %12 = arith.subf %11, %10 : vector<2x8x128xf32>
    %13 = arith.mulf %9, %12 : vector<2x8x128xf32>
    %c2_i32 = arith.constant 2 : i32
    %14 = arith.muli %arg0, %c2_i32 : i32
    %15 = arith.addi %14, %arg1 : i32
    %c2048_i32 = arith.constant 2048 : i32
    %16 = arith.muli %15, %c2048_i32 : i32
    %17 = tpu.iota {dimensions = array<i32: 0>} : vector<2x8x128xi32>
    %18 = tpu.iota {dimensions = array<i32: 1>} : vector<2x8x128xi32>
    %19 = tpu.iota {dimensions = array<i32: 2>} : vector<2x8x128xi32>
    %c8_i32 = arith.constant 8 : i32
    %20 = vector.broadcast %c8_i32 : i32 to vector<2x8x128xi32>
    %21 = arith.muli %17, %20 : vector<2x8x128xi32>
    %22 = arith.addi %21, %18 : vector<2x8x128xi32>
    %c128_i32 = arith.constant 128 : i32
    %23 = vector.broadcast %c128_i32 : i32 to vector<2x8x128xi32>
    %24 = arith.muli %22, %23 : vector<2x8x128xi32>
    %25 = vector.broadcast %16 : i32 to vector<2x8x128xi32>
    %26 = arith.addi %25, %24 : vector<2x8x128xi32>
    %27 = arith.addi %26, %19 : vector<2x8x128xi32>
    %c4000_i32 = arith.constant 4000 : i32
    %28 = vector.broadcast %c4000_i32 : i32 to vector<2x8x128xi32>
    %29 = arith.cmpi slt, %27, %28 : vector<2x8x128xi32>
    %cst_8 = arith.constant 0.000000e+00 : f32
    %30 = vector.broadcast %cst_8 : f32 to vector<2x8x128xf32>
    %31 = arith.select %29, %13, %30 : vector<2x8x128xi1>, vector<2x8x128xf32>
    %c0_i32_9 = arith.constant 0 : i32
    %c4_i32_10 = arith.constant 4 : i32
    %32 = arith.addi %c0_i32_9, %c4_i32_10 : i32
    %c1_i32_11 = arith.constant 1 : i32
    scf.for %arg6 = %c0_i32_9 to %32 step %c1_i32_11  : i32 {
      %c16_i32 = arith.constant 16 : i32
      %33 = arith.muli %arg6, %c16_i32 : i32
      %34 = tpu.assume_multiple %33, 16 : i32
      %35 = arith.index_cast %34 : i32 to index
      %c0_13 = arith.constant 0 : index
      %c0_14 = arith.constant 0 : index
      %c0_15 = arith.constant 0 : index
      %36 = vector.load %arg5[%35, %c0_13, %c0_14, %c0_15] : memref<64x2x8x128xf32, #tpu.memory_space<vmem>>, vector<16x2x8x128xf32>
      %37 = vector.shape_cast %31 : vector<2x8x128xf32> to vector<1x2x8x128xf32>
      %38 = vector.broadcast %37 : vector<1x2x8x128xf32> to vector<16x2x8x128xf32>
      %39 = arith.mulf %36, %38 : vector<16x2x8x128xf32>
      %cst_16 = arith.constant dense<0.000000e+00> : vector<16x8x128xf32>
      %40 = vector.multi_reduction <add>, %39, %cst_16 [1] : vector<16x2x8x128xf32> to vector<16x8x128xf32>
      %c0_17 = arith.constant 0 : index
      %41 = arith.index_cast %34 : i32 to index
      %c0_18 = arith.constant 0 : index
      %c0_19 = arith.constant 0 : index
      %42 = vector.load %arg4[%c0_17, %41, %c0_18, %c0_19] : memref<1x64x8x128xf32, #tpu.memory_space<vmem>>, vector<1x16x8x128xf32>
      %43 = vector.shape_cast %42 : vector<1x16x8x128xf32> to vector<16x8x128xf32>
      %44 = arith.addf %43, %40 : vector<16x8x128xf32>
      %c0_20 = arith.constant 0 : index
      %45 = arith.index_cast %34 : i32 to index
      %c0_21 = arith.constant 0 : index
      %c0_22 = arith.constant 0 : index
      %46 = vector.load %arg4[%c0_20, %45, %c0_21, %c0_22] : memref<1x64x8x128xf32, #tpu.memory_space<vmem>>, vector<1x16x8x128xf32>
      %47 = vector.shape_cast %46 : vector<1x16x8x128xf32> to vector<16x8x128xf32>
      %48 = vector.shape_cast %44 : vector<16x8x128xf32> to vector<1x16x8x128xf32>
      tpu.vector_store %arg4[%c0_20, %45, %c0_21, %c0_22], %48 {strides = array<i32>} : memref<1x64x8x128xf32, #tpu.memory_space<vmem>>, vector<1x16x8x128xf32>,
    }
    %c4_i32_12 = arith.constant 4 : i32
    return
  }
  func.func @transform_0(%arg0: i32, %arg1: i32) -> (i32, i32, i32, i32) {
    %c0_i32 = arith.constant 0 : i32
    %c0_i32_0 = arith.constant 0 : i32
    %c0_i32_1 = arith.constant 0 : i32
    %c0_i32_2 = arith.constant 0 : i32
    %c0_i32_3 = arith.constant 0 : i32
    return %c0_i32, %c0_i32_0, %c0_i32_1, %c0_i32_2 : i32, i32, i32, i32
  }
  func.func @transform_1(%arg0: i32, %arg1: i32) -> (i32, i32, i32, i32) {
    %c0_i32 = arith.constant 0 : i32
    %c0_i32_0 = arith.constant 0 : i32
    %c0_i32_1 = arith.constant 0 : i32
    return %arg0, %arg1, %c0_i32, %c0_i32_0 : i32, i32, i32, i32
  }
  func.func @transform_2(%arg0: i32, %arg1: i32) -> (i32, i32, i32, i32) {
    %c0_i32 = arith.constant 0 : i32
    %c0_i32_0 = arith.constant 0 : i32
    %c0_i32_1 = arith.constant 0 : i32
    %c0_i32_2 = arith.constant 0 : i32
    return %arg0, %c0_i32, %c0_i32_0, %c0_i32_1 : i32, i32, i32, i32
  }
}

</mosaic_0001>

<bundles_post_ra>
// kernel: tpu_custom_call.1
= control target key start
LH: loop header
LB: loop body
LE: loop exit
PB: predicated region body
PF: predicated region fallthrough
CT: control target
= control target key end

     0   :  { %7 = vsyncpa [#allocation4], 0  ;;  %s1652_s0 = inlined_call_operand.hbm [shape: f32[64,1,8,128], index: 0, kind: input, shape index: {}]   ;;  %s1653_s1 = inlined_call_operand.hbm [shape: f32[1,4,8,128], index: 1, kind: input, shape index: {}]   ;;  %s1654_s2 = inlined_call_operand.hbm [shape: f32[1,64,8,128], index: 2, kind: output, shape index: {}]  }
   0x1   :  { %8 = vsyncpa [#allocation7], 0 }
   0x2   :  { %10 = vsyncpa [#allocation7 + $0x1], 0 }
   0x3   :  { %11 = vsyncpa [#allocation5], 0  ;;  %s1162_s9 = smov 0   ;;  %s1164_s10 = smov 0  }
   0x4   :  { %s1166_s11 = smov 0   ;;  %s1168_s12 = smov 0  }
   0x5   :  { %s1170_s13 = smov 0   ;;  %s1172_s14 = smov 0  }
   0x6 LB: > { %s758_s15 = sadd.s32 4294967295, %s1121_s14   ;;  %p72_p0 = scmp.ne.s32.totalorder %s1105_s10, %s1101_s9  ;;  %s1121_s14 = sphi %s1172_s14, %s17_s14   ;;  %s1117_s13 = sphi %s1170_s13, %s1674_s13   ;;  %s1113_s12 = sphi %s1168_s12, %s1673_s12   ;;  %s1109_s11 = sphi %s1166_s11, %s1672_s11   ;;  %s1105_s10 = sphi %s1164_s10, %s1671_s10   ;;  %s1101_s9 = sphi %s1162_s9, %s1670_s9  }
   0x7   : > { %p1194_p1 = scmp.eq.s32.totalorder %s758_s15, 0  ;;  %p759_p2 = scmp.ge.s32.totalorder %s1121_s14, 1 }
   0x8   : > { %p109_p3 = scmp.lt.s32.totalorder %s1121_s14, 3  ;;  %s1139_s19 = smov [#allocation3]  }
   0x9   : > { %s1659_s16 = scalar_select %p1194_p1, 1, 0 }
   0xa   : > { %p1202_p4 = por %p1194_p1, %p72_p0  ;;  %p1206_p5 = pnand %p759_p2, %p109_p3 }
   0xb   : > { %s121_s20 = sshll.u32 %s1139_s19, 4  ;;  %s26_s22 = sadd.s32 1, %s1117_s13  ;;  %s122_s20 = int_to_ptr.vmem [resolvable:$true] %s121_s20 }
   0xc   : > { %s1660_s17 = scalar_select %p1202_p4, 1, 0 }
   0xd   : > { %s1661_s18 = scalar_select %p1206_p5, 1, 0 }
   0xe   : > { %p795_p6 = pneg %p1206_p5  ;;  %s963_s25 = scalar_lea.hbm %s1652_s0, 8192 }
   0xf   : > { %p964_p8 = scmp.ne.s32.totalorder %s1652_s0, %s963_s25  ;;  %p970_p12 = scmp.lt.u32.totalorder %s963_s25, %s1652_s0 }
  0x10   : > { %p1214_p7 = pnand %p795_p6, %p1194_p1 }
  0x12   : > { %p965_p9 = pneg %p1214_p7 }
  0x14   : > { %p966_p10 = pnand %p965_p9, %p964_p8 }
  0x16   : > { %p967_p11 = pneg %p966_p10 }
  0x18   : > { %p972_p13 = pnand %p970_p12, %p967_p11 }
  0x1a   : > { %975 = shalt.err (!%p972_p13)
}
  0x1b   : > { %s976_s30 = scalar_lea.vmem %s122_s20, 8192  ;;  %p984_p6 = scmp.lt.s32.totalorder %s122_s20, %s122_s20 }
  0x1c   : > { %p977_p0 = scmp.ne.s32.totalorder %s122_s20, %s976_s30  ;;  %p985_p4 = scmp.lt.s32.totalorder %s976_s30, %s976_s30 }
  0x1e   : > { %p979_p2 = pnand %p977_p0, %p965_p9  ;;  %p986_p1 = por %p985_p4, %p984_p6 }
  0x20   : > { %p980_p3 = pneg %p979_p2 }
  0x22   : > { %p987_p5 = pnand %p986_p1, %p980_p3 }
  0x24   : > { %990 = shalt.err (!%p987_p5)
}
  0x25   : > { %s1140_s3 = smov 128   ;;  %s1141_s4 = smov 8  }
  0x26   : > { %798 = dma.hbm_to_vmem [thread:$0]  (!%p1214_p7), %s1652_s0, 8192, %s122_s20, [#allocation4], %s1140_s3, %s1140_s3, %s1141_s4  }
  0x27   : > { %p27_p1 = scmp.ge.s32.totalorder %s26_s22, 2  ;;  %s59_s7 = sadd.s32 1, %s1109_s11 }
  0x28   : > { %p66_p4 = scmp.ne.s32.totalorder %s1109_s11, %s1105_s10  ;;  %p67_p5 = scmp.eq.s32.totalorder %s1121_s14, 0 }
  0x29   : > { %s1676_s22 = smov (%p27_p1, %s26_s22), 0  ;;  %p804_p9 = scmp.lt.s32.totalorder %s1121_s14, 2 }
  0x2a   : > { %p68_p8 = por %p67_p5, %p66_p4  ;;  %s55_s8 = ssub.s32 %s1117_s13, %s1676_s22 }
  0x2b   : > { %s135_s9 = sand.u32 1, %s1109_s11   ;;  %p57_p10 = scmp.eq.s32.totalorder %s55_s8, 0 }
  0x2c   : > { %s762_s19 = sshll.u32 %s135_s9, 4  ;;  %s780_s21 = sshll.u32 %s1117_s13, 8 }
  0x2d   : > { %s1250_s23 = scalar_select %p57_p10, %s1109_s11, %s59_s7  }
  0x2e   : > { %s1255_s20 = scalar_lea.hbm %s1653_s1, %s780_s21  ;;  %s139_s26 = scalar_lea.vmem [#allocation6], %s762_s19 }
  0x2f   : > { %s148_s27 = sshll.u32 %s139_s26, 4  ;;  %p1257_p7 = pnand %p804_p9, %p68_p8  ;;  %s1261_s27 = int_to_ptr.vmem [resolvable:$true] %s148_s27 }
  0x30   : > { %s1263_s29 = scalar_lea.sflag [#allocation7], %s135_s9  ;;  %s991_s30 = scalar_lea.hbm %s1255_s20, 256 }
  0x31   : > { %p992_p11 = scmp.ne.s32.totalorder %s1255_s20, %s991_s30  ;;  %p993_p12 = pneg %p1257_p7 }
  0x32   : > { %s996_s7 = scalar_lea.hbm %s1653_s1, 512  ;;  %p997_p2 = scmp.lt.u32.totalorder %s1255_s20, %s1653_s1 }
  0x33   : > { %p994_p13 = pnand %p993_p12, %p992_p11  ;;  %p998_p3 = scmp.lt.u32.totalorder %s996_s7, %s991_s30 }
  0x34   : > { %p1000_p1 = scmp.lt.u32.totalorder %s991_s30, %s1255_s20 }
  0x35   : > { %p995_p0 = pneg %p994_p13  ;;  %p999_p6 = por %p998_p3, %p997_p2 }
  0x37   : > { %p1001_p4 = por %p1000_p1, %p999_p6 }
  0x39   : > { %p1002_p5 = pnand %p1001_p4, %p995_p0 }
  0x3b   : > { %1005 = shalt.err (!%p1002_p5)
}
  0x3c   : > { %s1006_s9 = scalar_lea.vmem %s1261_s27, 256  ;;  %s1142_s21 = smov [#allocation6]  }
  0x3d   : > { %p1007_p8 = scmp.ne.s32.totalorder %s1261_s27, %s1006_s9  ;;  %s1011_s24 = sshll.u32 %s1142_s21, 4  ;;  %s1012_s24 = int_to_ptr.vmem [resolvable:$false] %s1011_s24 }
  0x3e   : > { %s1013_s25 = scalar_lea.vmem %s1012_s24, 512  ;;  %p1014_p11 = scmp.lt.s32.totalorder %s1261_s27, %s1012_s24 }
  0x3f   : > { %p1009_p9 = pnand %p1007_p8, %p993_p12  ;;  %p1015_p13 = scmp.lt.s32.totalorder %s1013_s25, %s1006_s9 }
  0x41   : > { %p1010_p10 = pneg %p1009_p9  ;;  %p1016_p2 = por %p1015_p13, %p1014_p11 }
  0x43   : > { %p1017_p3 = pnand %p1016_p2, %p1010_p10 }
  0x45   : > { %1020 = shalt.err (!%p1017_p3)
}
  0x46   : > { %802 = dma.hbm_to_vmem [thread:$0]  (!%p1257_p7), %s1255_s20, 256, %s1261_s27, %s1263_s29, %s1140_s3, %s1140_s3, %s1141_s4  }
  0x47   : > { %p1664_p12 = scmp.ne.s32.totalorder %s1661_s18, 0 }
  0x48   : > { %p1665_p0 = scmp.ne.s32.totalorder (!%p1664_p12), %s1659_s16, 0 }
  0x49   : > { %160 = sbr.rel (%p1664_p12) target bundleno = 236 (0xec), region = 28 }
  0x50   : > { %1088 = dma.done.wait (%p1665_p0), [#allocation4], 8192  }
  0x51   : > { %1090 = vsyncadd (%p1665_p0), [#allocation4], 4294959104  ;;  %s166_s26 = sand.u32 1, %s1105_s10   ;;  %p1666_p6 = scmp.ne.s32.totalorder %s1660_s17, 0 }
  0x52   : > { %s1301_s28 = sshll.u32 %s166_s26, 4  ;;  %s167_s30 = scalar_lea.sflag [#allocation7], %s166_s26 }
  0x53   : > { %s170_s5 = scalar_lea.vmem [#allocation6], %s1301_s28 }
  0x54   : > { %1092 = dma.done.wait (%p1666_p6), %s167_s30, 256  }
  0x55   : > { %1094 = vsyncadd (%p1666_p6), %s167_s30, 4294967040  ;;  %p768_p7 = scmp.ne.s32.totalorder %s1113_s12, 0 }
  0x56   : > { %v1143_v0 = vmov (!%p768_p7), 0.0  }
  0x57   : > { %190 = sbr.rel (%p768_p7) target bundleno = 119 (0x77), region = 40  ;;  %191 = vst [vmem:[#allocation8] sm:$0xff] (!%p768_p7), %v1143_v0  ;;  %192 = vst [vmem:[#allocation8 + $0x8] sm:$0xff] (!%p768_p7), %v1143_v0 }
  0x58   : > { %193 = vst [vmem:[#allocation8 + $0x10] sm:$0xff] (!%p768_p7), %v1143_v0  ;;  %194 = vst [vmem:[#allocation8 + $0x18] sm:$0xff] (!%p768_p7), %v1143_v0 }
  0x59   : > { %195 = vst [vmem:[#allocation8 + $0x20] sm:$0xff] (!%p768_p7), %v1143_v0  ;;  %196 = vst [vmem:[#allocation8 + $0x28] sm:$0xff] (!%p768_p7), %v1143_v0 }
  0x5a   : > { %197 = vst [vmem:[#allocation8 + $0x30] sm:$0xff] (!%p768_p7), %v1143_v0  ;;  %198 = vst [vmem:[#allocation8 + $0x38] sm:$0xff] (!%p768_p7), %v1143_v0 }
  0x5b   : > { %199 = vst [vmem:[#allocation8 + $0x40] sm:$0xff] (!%p768_p7), %v1143_v0  ;;  %200 = vst [vmem:[#allocation8 + $0x48] sm:$0xff] (!%p768_p7), %v1143_v0 }
  0x5c   : > { %201 = vst [vmem:[#allocation8 + $0x50] sm:$0xff] (!%p768_p7), %v1143_v0  ;;  %202 = vst [vmem:[#allocation8 + $0x58] sm:$0xff] (!%p768_p7), %v1143_v0 }
  0x5d   : > { %203 = vst [vmem:[#allocation8 + $0x60] sm:$0xff] (!%p768_p7), %v1143_v0  ;;  %204 = vst [vmem:[#allocation8 + $0x68] sm:$0xff] (!%p768_p7), %v1143_v0 }
  0x5e   : > { %205 = vst [vmem:[#allocation8 + $0x70] sm:$0xff] %v1143_v0  ;;  %206 = vst [vmem:[#allocation8 + $0x78] sm:$0xff] %v1143_v0 }
  0x5f   : > { %207 = vst [vmem:[#allocation8 + $0x80] sm:$0xff] %v1143_v0  ;;  %208 = vst [vmem:[#allocation8 + $0x88] sm:$0xff] %v1143_v0 }
  0x60   : > { %209 = vst [vmem:[#allocation8 + $0x90] sm:$0xff] %v1143_v0  ;;  %210 = vst [vmem:[#allocation8 + $0x98] sm:$0xff] %v1143_v0 }
  0x61   : > { %211 = vst [vmem:[#allocation8 + $0xa0] sm:$0xff] %v1143_v0  ;;  %212 = vst [vmem:[#allocation8 + $0xa8] sm:$0xff] %v1143_v0 }
  0x62   : > { %213 = vst [vmem:[#allocation8 + $0xb0] sm:$0xff] %v1143_v0  ;;  %214 = vst [vmem:[#allocation8 + $0xb8] sm:$0xff] %v1143_v0 }
  0x63   : > { %215 = vst [vmem:[#allocation8 + $0xc0] sm:$0xff] %v1143_v0  ;;  %216 = vst [vmem:[#allocation8 + $0xc8] sm:$0xff] %v1143_v0 }
  0x64   : > { %217 = vst [vmem:[#allocation8 + $0xd0] sm:$0xff] %v1143_v0  ;;  %218 = vst [vmem:[#allocation8 + $0xd8] sm:$0xff] %v1143_v0 }
  0x65   : > { %219 = vst [vmem:[#allocation8 + $0xe0] sm:$0xff] %v1143_v0  ;;  %220 = vst [vmem:[#allocation8 + $0xe8] sm:$0xff] %v1143_v0 }
  0x66   : > { %221 = vst [vmem:[#allocation8 + $0xf0] sm:$0xff] %v1143_v0  ;;  %222 = vst [vmem:[#allocation8 + $0xf8] sm:$0xff] %v1143_v0 }
  0x67   : > { %223 = vst [vmem:[#allocation8 + $0x100] sm:$0xff] %v1143_v0  ;;  %224 = vst [vmem:[#allocation8 + $0x108] sm:$0xff] %v1143_v0 }
  0x68   : > { %225 = vst [vmem:[#allocation8 + $0x110] sm:$0xff] %v1143_v0  ;;  %226 = vst [vmem:[#allocation8 + $0x118] sm:$0xff] %v1143_v0 }
  0x69   : > { %227 = vst [vmem:[#allocation8 + $0x120] sm:$0xff] %v1143_v0  ;;  %228 = vst [vmem:[#allocation8 + $0x128] sm:$0xff] %v1143_v0 }
  0x6a   : > { %229 = vst [vmem:[#allocation8 + $0x130] sm:$0xff] %v1143_v0  ;;  %230 = vst [vmem:[#allocation8 + $0x138] sm:$0xff] %v1143_v0 }
  0x6b   : > { %231 = vst [vmem:[#allocation8 + $0x140] sm:$0xff] %v1143_v0  ;;  %232 = vst [vmem:[#allocation8 + $0x148] sm:$0xff] %v1143_v0 }
  0x6c   : > { %233 = vst [vmem:[#allocation8 + $0x150] sm:$0xff] %v1143_v0  ;;  %234 = vst [vmem:[#allocation8 + $0x158] sm:$0xff] %v1143_v0 }
  0x6d   : > { %235 = vst [vmem:[#allocation8 + $0x160] sm:$0xff] %v1143_v0  ;;  %236 = vst [vmem:[#allocation8 + $0x168] sm:$0xff] %v1143_v0 }
  0x6e   : > { %237 = vst [vmem:[#allocation8 + $0x170] sm:$0xff] %v1143_v0  ;;  %238 = vst [vmem:[#allocation8 + $0x178] sm:$0xff] %v1143_v0 }
  0x6f   : > { %239 = vst [vmem:[#allocation8 + $0x180] sm:$0xff] %v1143_v0  ;;  %240 = vst [vmem:[#allocation8 + $0x188] sm:$0xff] %v1143_v0 }
  0x70   : > { %241 = vst [vmem:[#allocation8 + $0x190] sm:$0xff] %v1143_v0  ;;  %242 = vst [vmem:[#allocation8 + $0x198] sm:$0xff] %v1143_v0 }
  0x71   : > { %243 = vst [vmem:[#allocation8 + $0x1a0] sm:$0xff] %v1143_v0  ;;  %244 = vst [vmem:[#allocation8 + $0x1a8] sm:$0xff] %v1143_v0 }
  0x72   : > { %245 = vst [vmem:[#allocation8 + $0x1b0] sm:$0xff] %v1143_v0  ;;  %246 = vst [vmem:[#allocation8 + $0x1b8] sm:$0xff] %v1143_v0 }
  0x73   : > { %247 = vst [vmem:[#allocation8 + $0x1c0] sm:$0xff] %v1143_v0  ;;  %248 = vst [vmem:[#allocation8 + $0x1c8] sm:$0xff] %v1143_v0 }
  0x74   : > { %249 = vst [vmem:[#allocation8 + $0x1d0] sm:$0xff] %v1143_v0  ;;  %250 = vst [vmem:[#allocation8 + $0x1d8] sm:$0xff] %v1143_v0 }
  0x75   : > { %251 = vst [vmem:[#allocation8 + $0x1e0] sm:$0xff] %v1143_v0  ;;  %252 = vst [vmem:[#allocation8 + $0x1e8] sm:$0xff] %v1143_v0 }
  0x76   : > { %253 = vst [vmem:[#allocation8 + $0x1f0] sm:$0xff] %v1143_v0  ;;  %254 = vst [vmem:[#allocation8 + $0x1f8] sm:$0xff] %v1143_v0 }
  0x77 PF: > { %v1375_v1 = vld [vmem:[%s170_s5] sm:$0xff]  ;;  %v1379_v2 = vld [vmem:[%s170_s5 + $0x8] sm:$0xff]  ;;  %v1381_v3 = vmov 0.0   ;;  %v1383_v4 = vmov 0.0   ;;  %s1385_s16 = smov 0  }
  0x78 LB: >> { %s781_s17 = sshll.u32 %s1133_s16, 7  ;;  %s782_s3 = sshll.u32 %s1133_s16, 8  ;;  %s1133_s16 = sphi %s1385_s16, %s262_s16   ;;  %v1129_v4 = vphi %v1383_v4, %v1668_v4   ;;  %v1125_v3 = vphi %v1381_v3, %v1667_v3  }
  0x79   : >> { %s1397_s18 = scalar_lea.vmem [#allocation3], %s781_s17  ;;  %s1433_s4 = scalar_lea.vmem [#allocation2], %s782_s3 }
  0x7a   : >> { %v268_v5 = vld [vmem:[%s1397_s18] sm:$0xff]  ;;  %v269_v6 = vld [vmem:[%s1397_s18 + $0x8] sm:$0xff]  ;;  %v270_v7 = vld [vmem:[%s1397_s18 + $0x10] sm:$0xff]  ;;  %s262_s16 = sadd.s32 1, %s1133_s16  }
  0x7b   : >> { %v284_v8 = vsub.f32 %v268_v5, %v1375_v1  ;;  %v285_v9 = vsub.f32 %v268_v5, %v1379_v2  ;;  %v286_v10 = vsub.f32 %v269_v6, %v1375_v1  ;;  %v287_v11 = vsub.f32 %v269_v6, %v1379_v2  ;;  %v271_v12 = vld [vmem:[%s1397_s18 + $0x18] sm:$0xff]  ;;  %v272_v17 = vld [vmem:[%s1397_s18 + $0x20] sm:$0xff]  ;;  %v273_v26 = vld [vmem:[%s1397_s18 + $0x28] sm:$0xff]  ;;  %p259_p1 = scmp.ge.s32.totalorder %s262_s16, 4  }
  0x7c   : >> { %v288_v13 = vsub.f32 %v270_v7, %v1375_v1  ;;  %v289_v14 = vsub.f32 %v270_v7, %v1379_v2  ;;  %v290_v15 = vsub.f32 %v271_v12, %v1375_v1  ;;  %v291_v16 = vsub.f32 %v271_v12, %v1379_v2  ;;  %v274_v27 = vld [vmem:[%s1397_s18 + $0x30] sm:$0xff]  ;;  %v275_v42 = vld [vmem:[%s1397_s18 + $0x38] sm:$0xff]  ;;  %v276_v52 = vld [vmem:[%s1397_s18 + $0x40] sm:$0xff]  ;;  %s772_s20 = sshll.u32 (%p259_p1), %s1113_s12, 11  ;;  %s1496_s12 = smov (%p259_p1), 0  }
  0x7d   : >> { %v316_v18 = vmul.f32 %v284_v8, %v284_v8  ;;  %v317_v19 = vmul.f32 %v285_v9, %v285_v9  ;;  %v318_v20 = vmul.f32 %v286_v10, %v286_v10  ;;  %v319_v21 = vmul.f32 %v287_v11, %v287_v11  ;;  %v277_v56 = vld [vmem:[%s1397_s18 + $0x48] sm:$0xff]  ;;  %v278_v63 = vld [vmem:[%s1397_s18 + $0x50] sm:$0xff] }
  0x7e   : >> { %v320_v22 = vmul.f32 %v288_v13, %v288_v13  ;;  %v321_v23 = vmul.f32 %v289_v14, %v289_v14  ;;  %v322_v24 = vmul.f32 %v290_v15, %v290_v15  ;;  %v323_v25 = vmul.f32 %v291_v16, %v291_v16  ;;  %v279_v14 = vld [vmem:[%s1397_s18 + $0x58] sm:$0xff] }
  0x7f   : >> { %v348_v28 = vmul.f32 -23.08312, %v316_v18  ;;  %v349_v29 = vmul.f32 -23.08312, %v317_v19  ;;  %v350_v30 = vmul.f32 -23.08312, %v318_v20  ;;  %v292_v31 = vsub.f32 %v272_v17, %v1375_v1 }
  0x80   : >> { %v351_v32 = vmul.f32 -23.08312, %v319_v21  ;;  %v352_v33 = vmul.f32 -23.08312, %v320_v22  ;;  %v353_v34 = vmul.f32 -23.08312, %v321_v23  ;;  %v293_v35 = vsub.f32 %v272_v17, %v1379_v2 }
  0x81   : >> { %895 = vpow2.f32 %v348_v28  ;;  %v354_v36 = vmul.f32 -23.08312, %v322_v24  ;;  %v355_v37 = vmul.f32 -23.08312, %v323_v25  ;;  %v324_v38 = vmul.f32 %v292_v31, %v292_v31 }
  0x82   : >> { %897 = vpow2.f32 %v349_v29  ;;  %v325_v39 = vmul.f32 %v293_v35, %v293_v35  ;;  %v294_v40 = vsub.f32 %v273_v26, %v1375_v1  ;;  %v295_v41 = vsub.f32 %v273_v26, %v1379_v2 }
  0x83   : >> { %899 = vpow2.f32 %v350_v30  ;;  %v356_v43 = vmul.f32 -23.08312, %v324_v38  ;;  %v296_v44 = vsub.f32 %v274_v27, %v1375_v1  ;;  %v297_v45 = vsub.f32 %v274_v27, %v1379_v2  ;;  %v280_v27 = vld [vmem:[%s1397_s18 + $0x60] sm:$0xff] }
  0x84   : >> { %901 = vpow2.f32 %v351_v32  ;;  %v357_v46 = vmul.f32 -23.08312, %v325_v39  ;;  %v326_v47 = vmul.f32 %v294_v40, %v294_v40  ;;  %v327_v48 = vmul.f32 %v295_v41, %v295_v41  ;;  %v281_v40 = vld [vmem:[%s1397_s18 + $0x68] sm:$0xff] }
  0x85   : >> { %903 = vpow2.f32 %v352_v33  ;;  %v328_v49 = vmul.f32 %v296_v44, %v296_v44  ;;  %v329_v50 = vmul.f32 %v297_v45, %v297_v45  ;;  %v298_v51 = vsub.f32 %v275_v42, %v1375_v1 }
  0x86   : >> { %905 = vpow2.f32 %v353_v34  ;;  %v358_v53 = vmul.f32 -23.08312, %v326_v47  ;;  %v359_v54 = vmul.f32 -23.08312, %v327_v48  ;;  %v299_v55 = vsub.f32 %v275_v42, %v1379_v2 }
  0x87   : >> { %907 = vpow2.f32 %v354_v36  ;;  %v360_v57 = vmul.f32 -23.08312, %v328_v49  ;;  %v361_v58 = vmul.f32 -23.08312, %v329_v50  ;;  %v330_v59 = vmul.f32 %v298_v51, %v298_v51 }
  0x88   : >> { %909 = vpow2.f32 %v355_v37  ;;  %v331_v60 = vmul.f32 %v299_v55, %v299_v55  ;;  %v300_v61 = vsub.f32 %v276_v52, %v1375_v1  ;;  %v301_v62 = vsub.f32 %v276_v52, %v1379_v2 }
  0x89   : >> { %911 = vpow2.f32 %v356_v43  ;;  %v362_v0 = vmul.f32 -23.08312, %v330_v59  ;;  %v302_v5 = vsub.f32 %v277_v56, %v1375_v1  ;;  %v303_v6 = vsub.f32 %v277_v56, %v1379_v2 }
  0x8a   : >> { %913 = vpow2.f32 %v357_v46  ;;  %v363_v7 = vmul.f32 -23.08312, %v331_v60  ;;  %v332_v8 = vmul.f32 %v300_v61, %v300_v61  ;;  %v333_v9 = vmul.f32 %v301_v62, %v301_v62 }
  0x8b   : >> { %v896_v10 = vpop.eup %895  ;;  %915 = vpow2.f32 %v358_v53  ;;  %v334_v11 = vmul.f32 %v302_v5, %v302_v5  ;;  %v335_v12 = vmul.f32 %v303_v6, %v303_v6  ;;  %v304_v13 = vsub.f32 %v278_v63, %v1375_v1  ;;  %v282_v53 = vld [vmem:[%s1397_s18 + $0x70] sm:$0xff]  ;;  %v283_v6 = vld [vmem:[%s1397_s18 + $0x78] sm:$0xff] }
  0x8c   : >> { %v898_v15 = vpop.eup %897  ;;  %414 = vst [vmem:[%s1433_s4] sm:$0xff] %v896_v10  ;;  %917 = vpow2.f32 %v359_v54  ;;  %v364_v16 = vmul.f32 -23.08312, %v332_v8  ;;  %v365_v17 = vmul.f32 -23.08312, %v333_v9  ;;  %v305_v18 = vsub.f32 %v278_v63, %v1379_v2 }
  0x8d   : >> { %v900_v19 = vpop.eup %899  ;;  %415 = vst [vmem:[%s1433_s4 + $0x8] sm:$0xff] %v898_v15  ;;  %919 = vpow2.f32 %v360_v57  ;;  %v366_v20 = vmul.f32 -23.08312, %v334_v11  ;;  %v367_v21 = vmul.f32 -23.08312, %v335_v12  ;;  %v336_v22 = vmul.f32 %v304_v13, %v304_v13 }
  0x8e   : >> { %v902_v23 = vpop.eup %901  ;;  %416 = vst [vmem:[%s1433_s4 + $0x10] sm:$0xff] %v900_v19  ;;  %v446_v24 = vadd.f32 %v900_v19, %v896_v10  ;;  %921 = vpow2.f32 %v361_v58  ;;  %v337_v25 = vmul.f32 %v305_v18, %v305_v18  ;;  %v306_v26 = vsub.f32 %v279_v14, %v1375_v1 }
  0x8f   : >> { %v904_v28 = vpop.eup %903  ;;  %417 = vst [vmem:[%s1433_s4 + $0x18] sm:$0xff] %v902_v23  ;;  %v461_v29 = vadd.f32 %v902_v23, %v898_v15  ;;  %923 = vpow2.f32 %v362_v0  ;;  %v368_v30 = vmul.f32 -23.08312, %v336_v22  ;;  %v307_v31 = vsub.f32 %v279_v14, %v1379_v2 }
  0x90   : >> { %v906_v32 = vpop.eup %905  ;;  %418 = vst [vmem:[%s1433_s4 + $0x20] sm:$0xff] %v904_v28  ;;  %v447_v33 = vadd.f32 %v904_v28, %v446_v24  ;;  %925 = vpow2.f32 %v363_v7  ;;  %v369_v34 = vmul.f32 -23.08312, %v337_v25  ;;  %v338_v35 = vmul.f32 %v306_v26, %v306_v26 }
  0x91   : >> { %v908_v36 = vpop.eup %907  ;;  %419 = vst [vmem:[%s1433_s4 + $0x28] sm:$0xff] %v906_v32  ;;  %v462_v37 = vadd.f32 %v906_v32, %v461_v29  ;;  %927 = vpow2.f32 %v364_v16  ;;  %v339_v38 = vmul.f32 %v307_v31, %v307_v31  ;;  %v308_v39 = vsub.f32 %v280_v27, %v1375_v1 }
  0x92   : >> { %v910_v41 = vpop.eup %909  ;;  %420 = vst [vmem:[%s1433_s4 + $0x30] sm:$0xff] %v908_v36  ;;  %v448_v42 = vadd.f32 %v908_v36, %v447_v33  ;;  %929 = vpow2.f32 %v365_v17  ;;  %v370_v43 = vmul.f32 -23.08312, %v338_v35  ;;  %v309_v44 = vsub.f32 %v280_v27, %v1379_v2 }
  0x93   : >> { %v912_v45 = vpop.eup %911  ;;  %421 = vst [vmem:[%s1433_s4 + $0x38] sm:$0xff] %v910_v41  ;;  %v463_v46 = vadd.f32 %v910_v41, %v462_v37  ;;  %931 = vpow2.f32 %v366_v20  ;;  %v371_v47 = vmul.f32 -23.08312, %v339_v38  ;;  %v340_v48 = vmul.f32 %v308_v39, %v308_v39 }
  0x94   : >> { %v914_v49 = vpop.eup %913  ;;  %422 = vst [vmem:[%s1433_s4 + $0x40] sm:$0xff] %v912_v45  ;;  %v449_v50 = vadd.f32 %v912_v45, %v448_v42  ;;  %933 = vpow2.f32 %v367_v21  ;;  %v341_v51 = vmul.f32 %v309_v44, %v309_v44  ;;  %v310_v52 = vsub.f32 %v281_v40, %v1375_v1 }
  0x95   : >> { %v916_v54 = vpop.eup %915  ;;  %423 = vst [vmem:[%s1433_s4 + $0x48] sm:$0xff] %v914_v49  ;;  %v464_v55 = vadd.f32 %v914_v49, %v463_v46  ;;  %935 = vpow2.f32 %v368_v30  ;;  %v372_v56 = vmul.f32 -23.08312, %v340_v48  ;;  %v311_v57 = vsub.f32 %v281_v40, %v1379_v2 }
  0x96   : >> { %v918_v58 = vpop.eup %917  ;;  %424 = vst [vmem:[%s1433_s4 + $0x50] sm:$0xff] %v916_v54  ;;  %v450_v59 = vadd.f32 %v916_v54, %v449_v50  ;;  %937 = vpow2.f32 %v369_v34  ;;  %v373_v60 = vmul.f32 -23.08312, %v341_v51  ;;  %v342_v61 = vmul.f32 %v310_v52, %v310_v52 }
  0x97   : >> { %v920_v62 = vpop.eup %919  ;;  %425 = vst [vmem:[%s1433_s4 + $0x58] sm:$0xff] %v918_v58  ;;  %v465_v63 = vadd.f32 %v918_v58, %v464_v55  ;;  %939 = vpow2.f32 %v370_v43  ;;  %v343_v0 = vmul.f32 %v311_v57, %v311_v57  ;;  %v312_v5 = vsub.f32 %v282_v53, %v1375_v1 }
  0x98   : >> { %v922_v7 = vpop.eup %921  ;;  %426 = vst [vmem:[%s1433_s4 + $0x60] sm:$0xff] %v920_v62  ;;  %v451_v8 = vadd.f32 %v920_v62, %v450_v59  ;;  %941 = vpow2.f32 %v371_v47  ;;  %v374_v9 = vmul.f32 -23.08312, %v342_v61  ;;  %v313_v10 = vsub.f32 %v282_v53, %v1379_v2 }
  0x99   : >> { %v924_v11 = vpop.eup %923  ;;  %427 = vst [vmem:[%s1433_s4 + $0x68] sm:$0xff] %v922_v7  ;;  %v466_v12 = vadd.f32 %v922_v7, %v465_v63  ;;  %943 = vpow2.f32 %v372_v56  ;;  %v375_v13 = vmul.f32 -23.08312, %v343_v0  ;;  %v344_v14 = vmul.f32 %v312_v5, %v312_v5 }
  0x9a   : >> { %v926_v15 = vpop.eup %925  ;;  %428 = vst [vmem:[%s1433_s4 + $0x70] sm:$0xff] %v924_v11  ;;  %v452_v16 = vadd.f32 %v924_v11, %v451_v8  ;;  %945 = vpow2.f32 %v373_v60  ;;  %v345_v17 = vmul.f32 %v313_v10, %v313_v10  ;;  %v314_v18 = vsub.f32 %v283_v6, %v1375_v1 }
  0x9b   : >> { %v928_v19 = vpop.eup %927  ;;  %429 = vst [vmem:[%s1433_s4 + $0x78] sm:$0xff] %v926_v15  ;;  %v467_v20 = vadd.f32 %v926_v15, %v466_v12  ;;  %947 = vpow2.f32 %v374_v9  ;;  %v376_v21 = vmul.f32 -23.08312, %v344_v14  ;;  %v315_v22 = vsub.f32 %v283_v6, %v1379_v2 }
  0x9c   : >> { %v930_v23 = vpop.eup %929  ;;  %430 = vst [vmem:[%s1433_s4 + $0x80] sm:$0xff] %v928_v19  ;;  %v453_v24 = vadd.f32 %v928_v19, %v452_v16  ;;  %949 = vpow2.f32 %v375_v13  ;;  %v377_v25 = vmul.f32 -23.08312, %v345_v17  ;;  %v346_v26 = vmul.f32 %v314_v18, %v314_v18 }
  0x9d   : >> { %v932_v27 = vpop.eup %931  ;;  %431 = vst [vmem:[%s1433_s4 + $0x88] sm:$0xff] %v930_v23  ;;  %v468_v28 = vadd.f32 %v930_v23, %v467_v20  ;;  %951 = vpow2.f32 %v376_v21  ;;  %v347_v29 = vmul.f32 %v315_v22, %v315_v22  ;;  %v491_v63 = vlaneseq (%p259_p1) }
  0x9e   : >> { %v934_v30 = vpop.eup %933  ;;  %432 = vst [vmem:[%s1433_s4 + $0x90] sm:$0xff] %v932_v27  ;;  %v454_v31 = vadd.f32 %v932_v27, %v453_v24  ;;  %953 = vpow2.f32 %v377_v25  ;;  %v378_v32 = vmul.f32 -23.08312, %v346_v26  ;;  %v498_v6 = vstv (%p259_p1), %s772_s20 }
  0x9f   : >> { %v936_v33 = vpop.eup %935  ;;  %433 = vst [vmem:[%s1433_s4 + $0x98] sm:$0xff] %v934_v30  ;;  %v469_v34 = vadd.f32 %v934_v30, %v468_v28  ;;  %v379_v35 = vmul.f32 -23.08312, %v347_v29  ;;  %v492_v0 = vshrl.u32 (%p259_p1), %v491_v63, 7  ;;  %v494_v8 = vand.u32 (%p259_p1), 127, %v491_v63 }
  0xa0   : >> { %v938_v36 = vpop.eup %937  ;;  %434 = vst [vmem:[%s1433_s4 + $0xa0] sm:$0xff] %v936_v33  ;;  %v455_v37 = vadd.f32 %v936_v33, %v454_v31  ;;  %955 = vpow2.f32 %v378_v32 }
  0xa1   : >> { %v940_v38 = vpop.eup %939  ;;  %435 = vst [vmem:[%s1433_s4 + $0xa8] sm:$0xff] %v938_v36  ;;  %v470_v39 = vadd.f32 %v938_v36, %v469_v34  ;;  %957 = vpow2.f32 %v379_v35  ;;  %v496_v5 = vmul.u32 (%p259_p1), 128, %v492_v0 }
  0xa2   : >> { %v942_v40 = vpop.eup %941  ;;  %436 = vst [vmem:[%s1433_s4 + $0xb0] sm:$0xff] %v940_v38  ;;  %v456_v41 = vadd.f32 %v940_v38, %v455_v37 }
  0xa3   : >> { %v944_v42 = vpop.eup %943  ;;  %437 = vst [vmem:[%s1433_s4 + $0xb8] sm:$0xff] %v942_v40  ;;  %v471_v43 = vadd.f32 %v942_v40, %v470_v39  ;;  %v499_v9 = vadd.s32 (%p259_p1), %v498_v6, %v496_v5 }
  0xa4   : >> { %v946_v44 = vpop.eup %945  ;;  %438 = vst [vmem:[%s1433_s4 + $0xc0] sm:$0xff] %v944_v42  ;;  %v457_v45 = vadd.f32 %v944_v42, %v456_v41 }
  0xa5   : >> { %v948_v46 = vpop.eup %947  ;;  %439 = vst [vmem:[%s1433_s4 + $0xc8] sm:$0xff] %v946_v44  ;;  %v472_v47 = vadd.f32 %v946_v44, %v471_v43  ;;  %v501_v12 = vadd.s32 (%p259_p1), %v499_v9, %v494_v8 }
  0xa6   : >> { %v950_v48 = vpop.eup %949  ;;  %440 = vst [vmem:[%s1433_s4 + $0xd0] sm:$0xff] %v948_v46  ;;  %v458_v49 = vadd.f32 %v948_v46, %v457_v45 }
  0xa7   : >> { %v952_v50 = vpop.eup %951  ;;  %441 = vst [vmem:[%s1433_s4 + $0xd8] sm:$0xff] %v950_v48  ;;  %v473_v51 = vadd.f32 %v950_v48, %v472_v47  ;;  %vm503_vm0 = vcmp.lt.s32.totalorder (%p259_p1), %v501_v12, 4000 }
  0xa8   : >> { %v954_v52 = vpop.eup %953  ;;  %442 = vst [vmem:[%s1433_s4 + $0xe0] sm:$0xff] %v952_v50  ;;  %v459_v53 = vadd.f32 %v952_v50, %v458_v49 }
  0xa9   : >> { %443 = vst [vmem:[%s1433_s4 + $0xe8] sm:$0xff] %v954_v52  ;;  %v474_v54 = vadd.f32 %v954_v52, %v473_v51 }
  0xaa   : >> { %v956_v55 = vpop.eup %955  ;;  %261 = sbr.rel (!%p259_p1) target bundleno = 120 (0x78), region = 93 }
  0xab   : >> { %v958_v56 = vpop.eup %957  ;;  %444 = vst [vmem:[%s1433_s4 + $0xf0] sm:$0xff] %v956_v55  ;;  %v460_v57 = vadd.f32 %v956_v55, %v459_v53 }
  0xac   : >> { %445 = vst [vmem:[%s1433_s4 + $0xf8] sm:$0xff] %v958_v56  ;;  %v475_v58 = vadd.f32 %v958_v56, %v474_v54 }
  0xad   : >> { %v476_v59 = vadd.f32 %v1129_v4, %v460_v57  }
  0xae   : >> { %v477_v60 = vadd.f32 %v1125_v3, %v475_v58  }
  0xaf   : >> { %v1668_v4 = vmov %v476_v59  ;;  %v478_v61 = vmax.f32 (%p259_p1), %v476_v59, 1e-30 }
  0xb0   : >> { %v1667_v3 = vmov %v477_v60  ;;  %v479_v62 = vmax.f32 (%p259_p1), %v477_v60, 1e-30  ;;  %v495_v4 = vadd.s32 (%p259_p1), 8, %v492_v0 }
  0xb1   : > { %959 = vrcp.f32 %v478_v61 }
  0xb2   : > { %961 = vrcp.f32 %v479_v62  ;;  %v497_v7 = vmul.u32 128, %v495_v4 }
  0xb4   : > { %v500_v10 = vadd.s32 %v498_v6, %v497_v7 }
  0xb6   : > { %v502_v15 = vadd.s32 %v500_v10, %v494_v8 }
  0xb8   : > { %vm504_vm1 = vcmp.lt.s32.totalorder %v502_v15, 4000 }
  0xbb   : > { %v960_v11 = vpop.eup %959 }
  0xbc   : > { %v962_v13 = vpop.eup %961  ;;  %v482_v14 = vmul.f32 %v960_v11, %v478_v61 }
  0xbd   : > { %v483_v1 = vmul.f32 %v962_v13, %v479_v62 }
  0xbe   : > { %v484_v2 = vsub.f32 2.0, %v482_v14 }
  0xbf   : > { %v485_v3 = vsub.f32 2.0, %v483_v1 }
  0xc0   : > { %v486_v16 = vmul.f32 %v960_v11, %v484_v2 }
  0xc1   : > { %v487_v17 = vmul.f32 %v962_v13, %v485_v3 }
  0xc2   : > { %v1492_v18 = vsel %vm503_vm0, %v486_v16, 0.0 }
  0xc3   : > { %v1494_v19 = vsel %vm504_vm1, %v487_v17, 0.0 }
  0xc4 LB: >> { %s783_s27 = sshll.u32 %s1137_s12, 8  ;;  %s784_s29 = sshll.u32 %s1137_s12, 7  ;;  %s1137_s12 = sphi %s1496_s12, %s512_s12  }
  0xc5   : >> { %s1503_s6 = scalar_lea.vmem [#allocation2], %s783_s27  ;;  %s1511_s7 = scalar_lea.vmem [#allocation8], %s784_s29 }
  0xc6   : >> { %v516_v20 = vld [vmem:[%s1503_s6] sm:$0xff]  ;;  %v517_v21 = vld [vmem:[%s1503_s6 + $0x8] sm:$0xff]  ;;  %v518_v24 = vld [vmem:[%s1503_s6 + $0x10] sm:$0xff]  ;;  %s512_s12 = sadd.s32 1, %s1137_s12  }
  0xc7   : >> { %v548_v22 = vmul.f32 %v516_v20, %v1492_v18  ;;  %v549_v23 = vmul.f32 %v517_v21, %v1494_v19  ;;  %v519_v25 = vld [vmem:[%s1503_s6 + $0x18] sm:$0xff]  ;;  %v598_v26 = vld [vmem:[%s1511_s7] sm:$0xff]  ;;  %v550_v27 = vmul.f32 %v518_v24, %v1492_v18  ;;  %v521_v30 = vld [vmem:[%s1503_s6 + $0x28] sm:$0xff]  ;;  %p509_p4 = scmp.ge.s32.totalorder %s512_s12, 4  }
  0xc8   : >> { %v551_v28 = vmul.f32 %v519_v25, %v1494_v19  ;;  %v520_v29 = vld [vmem:[%s1503_s6 + $0x20] sm:$0xff]  ;;  %v599_v32 = vld [vmem:[%s1511_s7 + $0x8] sm:$0xff]  ;;  %v553_v34 = vmul.f32 %v521_v30, %v1494_v19  ;;  %v522_v35 = vld [vmem:[%s1503_s6 + $0x30] sm:$0xff]  ;;  %p1608_p5 = scmp.eq.s32.totalorder (%p509_p4), %s758_s15, 1  ;;  %s1144_s19 = smov (%p509_p4), [#allocation8]  }
  0xc9   : >> { %v580_v31 = vadd.f32 %v549_v23, %v548_v22  ;;  %v552_v33 = vmul.f32 %v520_v29, %v1492_v18  ;;  %v523_v36 = vld [vmem:[%s1503_s6 + $0x38] sm:$0xff]  ;;  %v600_v38 = vld [vmem:[%s1511_s7 + $0x10] sm:$0xff]  ;;  %v554_v39 = vmul.f32 %v522_v35, %v1492_v18  ;;  %v524_v41 = vld [vmem:[%s1503_s6 + $0x40] sm:$0xff]  ;;  %s655_s9 = sshll.u32 (%p509_p4), %s1144_s19, 4  ;;  %s656_s9 = int_to_ptr.vmem [resolvable:$true] %s655_s9 }
  0xca   : >> { %v581_v37 = vadd.f32 %v551_v28, %v550_v27  ;;  %v555_v40 = vmul.f32 %v523_v36, %v1494_v19  ;;  %v525_v42 = vld [vmem:[%s1503_s6 + $0x48] sm:$0xff]  ;;  %v601_v45 = vld [vmem:[%s1511_s7 + $0x18] sm:$0xff]  ;;  %v556_v46 = vmul.f32 %v524_v41, %v1492_v18  ;;  %v526_v48 = vld [vmem:[%s1503_s6 + $0x50] sm:$0xff]  ;;  %s1021_s21 = scalar_lea.vmem (%p509_p4), %s656_s9, 8192  ;;  %p1028_p11 = scmp.lt.s32.totalorder (%p509_p4), %s656_s9, %s656_s9 }
  0xcb   : >> { %v614_v43 = vadd.f32 %v598_v26, %v580_v31  ;;  %v582_v44 = vadd.f32 %v553_v34, %v552_v33  ;;  %v557_v47 = vmul.f32 %v525_v42, %v1494_v19  ;;  %v527_v49 = vld [vmem:[%s1503_s6 + $0x58] sm:$0xff]  ;;  %v602_v52 = vld [vmem:[%s1511_s7 + $0x20] sm:$0xff]  ;;  %v558_v53 = vmul.f32 %v526_v48, %v1492_v18  ;;  %v529_v56 = vld [vmem:[%s1503_s6 + $0x68] sm:$0xff]  ;;  %p1022_p8 = scmp.ne.s32.totalorder (%p509_p4), %s656_s9, %s1021_s21  ;;  %p1029_p13 = scmp.lt.s32.totalorder (%p509_p4), %s1021_s21, %s1021_s21 }
  0xcc   : >> { %v615_v50 = vadd.f32 %v599_v32, %v581_v37  ;;  %v583_v51 = vadd.f32 %v555_v40, %v554_v39  ;;  %v559_v54 = vmul.f32 %v527_v49, %v1494_v19  ;;  %v528_v55 = vld [vmem:[%s1503_s6 + $0x60] sm:$0xff]  ;;  %v603_v59 = vld [vmem:[%s1511_s7 + $0x28] sm:$0xff]  ;;  %v561_v61 = vmul.f32 %v529_v56, %v1494_v19  ;;  %v530_v62 = vld [vmem:[%s1503_s6 + $0x70] sm:$0xff] }
  0xcd   : >> { %630 = vst [vmem:[%s1511_s7] sm:$0xff] %v614_v43  ;;  %v616_v57 = vadd.f32 %v600_v38, %v582_v44  ;;  %v584_v58 = vadd.f32 %v557_v47, %v556_v46  ;;  %v560_v60 = vmul.f32 %v528_v55, %v1492_v18  ;;  %v531_v63 = vld [vmem:[%s1503_s6 + $0x78] sm:$0xff]  ;;  %v604_v5 = vld [vmem:[%s1511_s7 + $0x30] sm:$0xff]  ;;  %v562_v6 = vmul.f32 %v530_v62, %v1492_v18  ;;  %v532_v8 = vld [vmem:[%s1503_s6 + $0x80] sm:$0xff]  ;;  %p1023_p9 = pnand (%p509_p4), %p1022_p8, %p1608_p5  ;;  %p1030_p2 = por (%p509_p4), %p1029_p13, %p1028_p11 }
  0xce   : >> { %631 = vst [vmem:[%s1511_s7 + $0x8] sm:$0xff] %v615_v50  ;;  %v617_v0 = vadd.f32 %v601_v45, %v583_v51  ;;  %v585_v4 = vadd.f32 %v559_v54, %v558_v53  ;;  %v563_v7 = vmul.f32 %v531_v63, %v1494_v19  ;;  %v533_v9 = vld [vmem:[%s1503_s6 + $0x88] sm:$0xff]  ;;  %v605_v12 = vld [vmem:[%s1511_s7 + $0x38] sm:$0xff]  ;;  %v564_v13 = vmul.f32 %v532_v8, %v1492_v18  ;;  %v534_v15 = vld [vmem:[%s1503_s6 + $0x90] sm:$0xff] }
  0xcf   : >> { %632 = vst [vmem:[%s1511_s7 + $0x10] sm:$0xff] %v616_v57  ;;  %v618_v10 = vadd.f32 %v602_v52, %v584_v58  ;;  %v586_v11 = vadd.f32 %v561_v61, %v560_v60  ;;  %v565_v14 = vmul.f32 %v533_v9, %v1494_v19  ;;  %v535_v1 = vld [vmem:[%s1503_s6 + $0x98] sm:$0xff]  ;;  %v606_v16 = vld [vmem:[%s1511_s7 + $0x40] sm:$0xff]  ;;  %v566_v17 = vmul.f32 %v534_v15, %v1492_v18  ;;  %v537_v22 = vld [vmem:[%s1503_s6 + $0xa8] sm:$0xff]  ;;  %p1024_p10 = pneg (%p509_p4), %p1023_p9 }
  0xd0   : >> { %633 = vst [vmem:[%s1511_s7 + $0x18] sm:$0xff] %v617_v0  ;;  %v619_v2 = vadd.f32 %v603_v59, %v585_v4  ;;  %v587_v3 = vadd.f32 %v563_v7, %v562_v6  ;;  %v567_v20 = vmul.f32 %v535_v1, %v1494_v19  ;;  %v536_v21 = vld [vmem:[%s1503_s6 + $0xa0] sm:$0xff]  ;;  %v607_v25 = vld [vmem:[%s1511_s7 + $0x48] sm:$0xff]  ;;  %v569_v27 = vmul.f32 %v537_v22, %v1494_v19  ;;  %v538_v28 = vld [vmem:[%s1503_s6 + $0xb0] sm:$0xff] }
  0xd1   : >> { %634 = vst [vmem:[%s1511_s7 + $0x20] sm:$0xff] %v618_v10  ;;  %v620_v23 = vadd.f32 %v604_v5, %v586_v11  ;;  %v588_v24 = vadd.f32 %v565_v14, %v564_v13  ;;  %v568_v26 = vmul.f32 %v536_v21, %v1492_v18  ;;  %v539_v29 = vld [vmem:[%s1503_s6 + $0xb8] sm:$0xff]  ;;  %v608_v32 = vld [vmem:[%s1511_s7 + $0x50] sm:$0xff]  ;;  %v570_v33 = vmul.f32 %v538_v28, %v1492_v18  ;;  %v540_v35 = vld [vmem:[%s1503_s6 + $0xc0] sm:$0xff]  ;;  %p1031_p3 = pnand (%p509_p4), %p1030_p2, %p1024_p10 }
  0xd2   : >> { %635 = vst [vmem:[%s1511_s7 + $0x28] sm:$0xff] %v619_v2  ;;  %v621_v30 = vadd.f32 %v605_v12, %v587_v3  ;;  %v589_v31 = vadd.f32 %v567_v20, %v566_v17  ;;  %v571_v34 = vmul.f32 %v539_v29, %v1494_v19  ;;  %v541_v36 = vld [vmem:[%s1503_s6 + $0xc8] sm:$0xff]  ;;  %v609_v39 = vld [vmem:[%s1511_s7 + $0x58] sm:$0xff]  ;;  %v572_v40 = vmul.f32 %v540_v35, %v1492_v18  ;;  %v542_v42 = vld [vmem:[%s1503_s6 + $0xd0] sm:$0xff] }
  0xd3   : >> { %636 = vst [vmem:[%s1511_s7 + $0x30] sm:$0xff] %v620_v23  ;;  %v622_v37 = vadd.f32 %v606_v16, %v588_v24  ;;  %v590_v38 = vadd.f32 %v569_v27, %v568_v26  ;;  %v573_v41 = vmul.f32 %v541_v36, %v1494_v19  ;;  %v543_v43 = vld [vmem:[%s1503_s6 + $0xd8] sm:$0xff]  ;;  %v610_v46 = vld [vmem:[%s1511_s7 + $0x60] sm:$0xff]  ;;  %v574_v47 = vmul.f32 %v542_v42, %v1492_v18  ;;  %v545_v50 = vld [vmem:[%s1503_s6 + $0xe8] sm:$0xff] }
  0xd4   : >> { %637 = vst [vmem:[%s1511_s7 + $0x38] sm:$0xff] %v621_v30  ;;  %v623_v44 = vadd.f32 %v607_v25, %v589_v31  ;;  %v591_v45 = vadd.f32 %v571_v34, %v570_v33  ;;  %v575_v48 = vmul.f32 %v543_v43, %v1494_v19  ;;  %v544_v49 = vld [vmem:[%s1503_s6 + $0xe0] sm:$0xff]  ;;  %v611_v53 = vld [vmem:[%s1511_s7 + $0x68] sm:$0xff]  ;;  %v577_v55 = vmul.f32 %v545_v50, %v1494_v19  ;;  %v546_v56 = vld [vmem:[%s1503_s6 + $0xf0] sm:$0xff] }
  0xd5   : >> { %638 = vst [vmem:[%s1511_s7 + $0x40] sm:$0xff] %v622_v37  ;;  %v624_v51 = vadd.f32 %v608_v32, %v590_v38  ;;  %v592_v52 = vadd.f32 %v573_v41, %v572_v40  ;;  %v576_v54 = vmul.f32 %v544_v49, %v1492_v18  ;;  %v547_v57 = vld [vmem:[%s1503_s6 + $0xf8] sm:$0xff]  ;;  %v612_v60 = vld [vmem:[%s1511_s7 + $0x70] sm:$0xff]  ;;  %v578_v61 = vmul.f32 %v546_v56, %v1492_v18 }
  0xd6   : >> { %639 = vst [vmem:[%s1511_s7 + $0x48] sm:$0xff] %v623_v44  ;;  %v625_v58 = vadd.f32 %v609_v39, %v591_v45  ;;  %v593_v59 = vadd.f32 %v575_v48, %v574_v47  ;;  %v579_v62 = vmul.f32 %v547_v57, %v1494_v19  ;;  %v613_v4 = vld [vmem:[%s1511_s7 + $0x78] sm:$0xff]  ;;  %511 = sbr.rel (!%p509_p4) target bundleno = 196 (0xc4), region = 104 }
  0xd7   : >> { %640 = vst [vmem:[%s1511_s7 + $0x50] sm:$0xff] %v624_v51  ;;  %v626_v63 = vadd.f32 %v610_v46, %v592_v52  ;;  %v594_v0 = vadd.f32 %v577_v55, %v576_v54 }
  0xd8   : >> { %641 = vst [vmem:[%s1511_s7 + $0x58] sm:$0xff] %v625_v58  ;;  %v627_v5 = vadd.f32 %v611_v53, %v593_v59  ;;  %v595_v6 = vadd.f32 %v579_v62, %v578_v61 }
  0xd9   : >> { %642 = vst [vmem:[%s1511_s7 + $0x60] sm:$0xff] %v626_v63  ;;  %v628_v7 = vadd.f32 %v612_v60, %v594_v0 }
  0xda   : >> { %643 = vst [vmem:[%s1511_s7 + $0x68] sm:$0xff] %v627_v5  ;;  %v629_v8 = vadd.f32 %v613_v4, %v595_v6 }
  0xdb   : >> { %644 = vst [vmem:[%s1511_s7 + $0x70] sm:$0xff] %v628_v7 }
  0xdc   : >> { %645 = vst [vmem:[%s1511_s7 + $0x78] sm:$0xff] %v629_v8 }
  0xdd   : > { %1034 = shalt.err (!%p1031_p3)
}
  0xde   : > { %s1035_s15 = scalar_lea.hbm %s1654_s2, 8192 }
  0xdf   : > { %p1036_p12 = scmp.ne.s32.totalorder %s1654_s2, %s1035_s15  ;;  %p1041_p7 = scmp.lt.u32.totalorder %s1035_s15, %s1654_s2 }
  0xe1   : > { %p1037_p0 = pnand %p1036_p12, %p1608_p5 }
  0xe3   : > { %p1038_p6 = pneg %p1037_p0 }
  0xe5   : > { %p1043_p1 = pnand %p1041_p7, %p1038_p6 }
  0xe7   : > { %1046 = shalt.err (!%p1043_p1)
}
  0xe8   : > { %s1145_s16 = smov 128   ;;  %s1146_s17 = smov 8  }
  0xe9   : > { %792 = dma.vmem_to_hbm [thread:$0]  (%p1608_p5), %s656_s9, 8192, %s1654_s2, [#allocation5], %s1145_s16, %s1145_s16, %s1146_s17  }
  0xea   : > { %1096 = dma.done.wait (%p1608_p5), [#allocation5], 8192  }
  0xeb   : > { %1098 = vsyncadd (%p1608_p5), [#allocation5], 4294959104 }
  0xec PF: > { %s17_s14 = sadd.s32 1, %s1121_s14   ;;  %s1670_s9 = smov %s1105_s10 }
  0xed   : > { %p14_p4 = scmp.ge.s32.totalorder %s17_s14, 4   ;;  %s1671_s10 = smov %s1109_s11 }
  0xee   : > { %s1672_s11 = smov %s1250_s23  ;;  %s1673_s12 = smov %s1117_s13 }
  0xef   : > { %s1674_s13 = smov %s1676_s22  ;;  %16 = sbr.rel (!%p14_p4) target bundleno = 6 (0x6), region = 115 }
  0xf6   :  { %671 = vsyncpa [#allocation4], 1 }
  0xf7   :  { %673 = vsyncpa [#allocation4 + $0x1], 1 }
  0xf8   :  { %674 = vsyncpa [#allocation7], 1 }
  0xf9   :  { %676 = vsyncpa [#allocation7 + $0x1], 1 }
  0xfa   :  { %677 = vsyncpa [#allocation5], 1 }
  0xfb   :  { %679 = vsyncpa [#allocation5 + $0x1], 1 }

</bundles_post_ra>
